<compile_context>
chip_gen: v6e
topology: v6e:2x2x1
jax: 0.10.0
libtpu: 0.0.40
codegen_flags: <defaults>
</compile_context>

<pallas_src>
import jax
import jax.numpy as jnp
from jax.experimental import pallas as pl
from jax.experimental.pallas import tpu as pltpu


# ---- sizes (PyTorch spec) ---------------------------------------------------
IN_F = 28 * 28          # 784
H1 = 256
H2 = 128
H3 = 64
OUT = 10

# ---- lane-aligned padded sizes (hidden/out only; input stays 784) -----------
H3_PAD = 128
OUT_PAD = 128

MAX_TB = 512            # upper bound on rows per batch tile


def _round_up(x, m):
    return ((x + m - 1) // m) * m


def choose_tile_b(batch):
    """Pick the batch-tile size.

    Large tiles amortize the ~0.35 us/step pipeline overhead and MXU weight
    reloads; for bigger batches we keep >= 2 tiles so the "parallel" grid axis
    can shard across both v7x TensorCores.  Multiple of 16 (bf16 sublanes).
    """
    if batch <= 16:
        return 16
    return min(MAX_TB, _round_up(pl.cdiv(batch, 2), 16))


def mlp_kernel(x_ref,
               w1_ref, b1_ref,
               w2_ref, b2_ref,
               w3_ref, b3_ref,
               w4_ref, b4_ref,
               o_ref):
    """Fused 4-layer MLP on one (TB, 784) batch tile.

    Input arrives as f32 and is cast to bf16 in-kernel (VALU has slack);
    all matmuls run bf16 on the MXU with f32 accumulation, bias-add and ReLU
    are f32.  Output is stored bf16, lane-dense (128 wide).
    """
    x = x_ref[...].astype(jnp.bfloat16)                              # (TB, 784)

    h = jnp.dot(x, w1_ref[...], preferred_element_type=jnp.float32) + b1_ref[...]
    h = jnp.maximum(h, 0.0)                                          # relu(fc1)

    # nn.Dropout(0.2) in eval mode is the identity.

    h = jnp.dot(h.astype(jnp.bfloat16), w2_ref[...],
                preferred_element_type=jnp.float32) + b2_ref[...]
    h = jnp.maximum(h, 0.0)                                          # relu(fc2)

    h = jnp.dot(h.astype(jnp.bfloat16), w3_ref[...],
                preferred_element_type=jnp.float32) + b3_ref[...]
    h = jnp.maximum(h, 0.0)                                          # relu(fc3)

    o = jnp.dot(h.astype(jnp.bfloat16), w4_ref[...],
                preferred_element_type=jnp.float32) + b4_ref[...]    # fc4 logits
    o_ref[...] = o.astype(o_ref.dtype)


def pack_params(params):
    """Pad ragged hidden/output dims to lane multiples and cast MXU operands.

    Weights are stored as (fan_in, fan_out); no transpose is needed.  Only
    fc3/fc4 dims (64, 10) are zero-padded to 128; zero padding keeps padded
    lanes exactly 0 through ReLU and the final bias-add.  Biases stay f32.
    """
    (w1, b1), (w2, b2), (w3, b3), (w4, b4) = params
    w1p = w1.astype(jnp.bfloat16)                                             # (784, 256)
    w2p = w2.astype(jnp.bfloat16)                                             # (256, 128)
    w3p = jnp.pad(w3, ((0, 0), (0, H3_PAD - H3))).astype(jnp.bfloat16)        # (128, 128)
    b3p = jnp.pad(b3, ((0, 0), (0, H3_PAD - H3)))                             # (1, 128) f32
    w4p = jnp.pad(w4, ((0, H3_PAD - H3), (0, OUT_PAD - OUT))).astype(jnp.bfloat16)  # (128,128)
    b4p = jnp.pad(b4, ((0, 0), (0, OUT_PAD - OUT)))                           # (1, 128) f32
    return (w1p, b1, w2p, b2, w3p, b3p, w4p, b4p)


def mlp_forward(x_nchw, params):
    """x_nchw: (B, 1, 28, 28) float32. Returns logits (B, 10) float32."""
    B = x_nchw.shape[0]
    x_flat = x_nchw.reshape(B, IN_F)        # nn.Flatten; stays f32, no padding

    tb = choose_tile_b(B)
    n_tiles = pl.cdiv(B, tb)                # edge block output stores are masked

    w1p, b1, w2p, b2, w3p, b3p, w4p, b4p = pack_params(params)

    # Resident (constant index_map) specs for weights/biases.
    def const_spec(shape):
        return pl.BlockSpec(shape, lambda i: (0, 0))

    flops = 2 * B * (IN_F * H1 + H1 * H2 + H2 * H3_PAD + H3_PAD * OUT_PAD)
    weight_bytes = 2 * (IN_F * H1 + H1 * H2 + H2 * H3_PAD + H3_PAD * OUT_PAD) \
        + 4 * (H1 + H2 + H3_PAD + OUT_PAD)
    bytes_accessed = B * IN_F * 4 + weight_bytes + B * OUT_PAD * 2   # f32 in, bf16 out

    out_pad = pl.pallas_call(
        mlp_kernel,
        out_shape=jax.ShapeDtypeStruct((B, OUT_PAD), jnp.bfloat16),
        grid_spec=pltpu.PrefetchScalarGridSpec(
            num_scalar_prefetch=0,
            grid=(n_tiles,),
            in_specs=[
                # x tile: last block dim equals full array dim (784) -> legal.
                # (If exposed DMA shows up on v5e, sweep pipeline_mode=pl.Buffered(3) here.)
                pl.BlockSpec((tb, IN_F), lambda i: (i, 0)),
                const_spec((IN_F, H1)),       const_spec((1, H1)),       # fc1
                const_spec((H1, H2)),         const_spec((1, H2)),       # fc2
                const_spec((H2, H3_PAD)),     const_spec((1, H3_PAD)),   # fc3 (padded)
                const_spec((H3_PAD, OUT_PAD)), const_spec((1, OUT_PAD)), # fc4 (padded)
            ],
            out_specs=pl.BlockSpec((tb, OUT_PAD), lambda i: (i, 0)),
        ),
        compiler_params=pltpu.CompilerParams(
            dimension_semantics=("parallel",),
            vmem_limit_bytes=32 * 1024 * 1024,
        ),
        cost_estimate=pl.CostEstimate(
            flops=flops, transcendentals=0, bytes_accessed=bytes_accessed),
    )(x_flat, w1p, b1, w2p, b2, w3p, b3p, w4p, b4p)

    return out_pad[:B, :OUT].astype(jnp.float32)


def init_linear(key, fan_in, fan_out):
    """Deterministic init mimicking PyTorch nn.Linear default (uniform +-1/sqrt(fan_in)).

    Weight is stored as (fan_in, fan_out) and bias as (1, fan_out) for clean
    2D broadcasting inside the kernel.
    """
    kw, kb = jax.random.split(key)
    bound = 1.0 / jnp.sqrt(float(fan_in))
    w = jax.random.uniform(kw, (fan_in, fan_out), jnp.float32, -bound, bound)
    b = jax.random.uniform(kb, (1, fan_out), jnp.float32, -bound, bound)
    return w, b


def reference_forward(x_nchw, params):
    """Pure-JAX f32 reference for correctness checking."""
    B = x_nchw.shape[0]
    h = x_nchw.reshape(B, IN_F)
    (w1, b1), (w2, b2), (w3, b3), (w4, b4) = params
    h = jnp.maximum(h @ w1 + b1, 0.0)
    h = jnp.maximum(h @ w2 + b2, 0.0)
    h = jnp.maximum(h @ w3 + b3, 0.0)
    return h @ w4 + b4


if __name__ == "__main__":
    key = jax.random.PRNGKey(0)
    kx, k1, k2, k3, k4 = jax.random.split(key, 5)

    # Small MNIST-shaped batch: (batch=2, channels=1, 28, 28), NCHW like PyTorch.
    x = jax.random.normal(kx, (2, 1, 28, 28), jnp.float32)

    params = (
        init_linear(k1, IN_F, H1),   # fc1
        init_linear(k2, H1, H2),     # fc2
        init_linear(k3, H2, H3),     # fc3
        init_linear(k4, H3, OUT),    # fc4
    )

    logits = mlp_forward(x, params)
    logits = jax.block_until_ready(logits)

    ref = reference_forward(x, params)
    assert logits.shape == (2, OUT)
    assert bool(jnp.all(jnp.isfinite(logits)))
    # bf16 matmul operands / bf16 logit store with f32 accumulation -> loose tol.
    assert jnp.allclose(logits, ref, atol=5e-2, rtol=5e-2)

    print("KERNEL_OK")
</pallas_src>

<mosaic_0001>
module attributes {stable_mosaic.version = 11 : i64} {
  func.func @mlp_kernel(%arg0: i32, %arg1: memref<16x784xf32, #tpu.memory_space<vmem>>, %arg2: memref<784x256xbf16, #tpu.memory_space<vmem>>, %arg3: memref<1x256xf32, #tpu.memory_space<vmem>>, %arg4: memref<256x128xbf16, #tpu.memory_space<vmem>>, %arg5: memref<1x128xf32, #tpu.memory_space<vmem>>, %arg6: memref<128x128xbf16, #tpu.memory_space<vmem>>, %arg7: memref<1x128xf32, #tpu.memory_space<vmem>>, %arg8: memref<128x128xbf16, #tpu.memory_space<vmem>>, %arg9: memref<1x128xf32, #tpu.memory_space<vmem>>, %arg10: memref<16x128xbf16, #tpu.memory_space<vmem>>) attributes {dimension_semantics = [#tpu.dimension_semantics<parallel>], iteration_bounds = array<i64: 1>, scalar_prefetch = 0 : i64, scratch_operands = 0 : i64, tpu.core_type = #tpu.core_type<tc>, window_params = [{transform_indices = @transform_0, window_bounds = array<i64: 16, 784>}, {pipeline_mode = #tpu.pipeline_mode<synchronous>, transform_indices = @transform_1, window_bounds = array<i64: 784, 256>}, {pipeline_mode = #tpu.pipeline_mode<synchronous>, transform_indices = @transform_2, window_bounds = array<i64: 1, 256>}, {pipeline_mode = #tpu.pipeline_mode<synchronous>, transform_indices = @transform_3, window_bounds = array<i64: 256, 128>}, {pipeline_mode = #tpu.pipeline_mode<synchronous>, transform_indices = @transform_4, window_bounds = array<i64: 1, 128>}, {pipeline_mode = #tpu.pipeline_mode<synchronous>, transform_indices = @transform_5, window_bounds = array<i64: 128, 128>}, {pipeline_mode = #tpu.pipeline_mode<synchronous>, transform_indices = @transform_6, window_bounds = array<i64: 1, 128>}, {pipeline_mode = #tpu.pipeline_mode<synchronous>, transform_indices = @transform_7, window_bounds = array<i64: 128, 128>}, {pipeline_mode = #tpu.pipeline_mode<synchronous>, transform_indices = @transform_8, window_bounds = array<i64: 1, 128>}, {transform_indices = @transform_9, window_bounds = array<i64: 16, 128>}]} {
    %c0 = arith.constant 0 : index
    %c0_0 = arith.constant 0 : index
    %0 = vector.load %arg1[%c0, %c0_0] : memref<16x784xf32, #tpu.memory_space<vmem>>, vector<16x784xf32>
    %1 = arith.truncf %0 : vector<16x784xf32> to vector<16x784xbf16>
    %c0_1 = arith.constant 0 : index
    %c0_2 = arith.constant 0 : index
    %2 = vector.load %arg2[%c0_1, %c0_2] : memref<784x256xbf16, #tpu.memory_space<vmem>>, vector<784x256xbf16>
    %cst = arith.constant dense<0.000000e+00> : vector<16x256xf32>
    %3 = tpu.matmul %1, %2, %cst {dimension_numbers = #tpu.dot_dimension_numbers<[1], [0], [0], [1], [0, 0, 1, 1], [], []>} : vector<16x784xbf16>, vector<784x256xbf16>, vector<16x256xf32> -> vector<16x256xf32>
    %c0_3 = arith.constant 0 : index
    %c0_4 = arith.constant 0 : index
    %4 = vector.load %arg3[%c0_3, %c0_4] : memref<1x256xf32, #tpu.memory_space<vmem>>, vector<1x256xf32>
    %5 = vector.broadcast %4 : vector<1x256xf32> to vector<16x256xf32>
    %6 = arith.addf %3, %5 : vector<16x256xf32>
    %cst_5 = arith.constant 0.000000e+00 : f32
    %7 = vector.broadcast %cst_5 : f32 to vector<16x256xf32>
    %8 = arith.maximumf %6, %7 : vector<16x256xf32>
    %9 = arith.truncf %8 : vector<16x256xf32> to vector<16x256xbf16>
    %c0_6 = arith.constant 0 : index
    %c0_7 = arith.constant 0 : index
    %10 = vector.load %arg4[%c0_6, %c0_7] : memref<256x128xbf16, #tpu.memory_space<vmem>>, vector<256x128xbf16>
    %cst_8 = arith.constant dense<0.000000e+00> : vector<16x128xf32>
    %11 = tpu.matmul %9, %10, %cst_8 {dimension_numbers = #tpu.dot_dimension_numbers<[1], [0], [0], [1], [0, 0, 1, 1], [], []>} : vector<16x256xbf16>, vector<256x128xbf16>, vector<16x128xf32> -> vector<16x128xf32>
    %c0_9 = arith.constant 0 : index
    %c0_10 = arith.constant 0 : index
    %12 = vector.load %arg5[%c0_9, %c0_10] : memref<1x128xf32, #tpu.memory_space<vmem>>, vector<1x128xf32>
    %13 = vector.broadcast %12 : vector<1x128xf32> to vector<16x128xf32>
    %14 = arith.addf %11, %13 : vector<16x128xf32>
    %cst_11 = arith.constant 0.000000e+00 : f32
    %15 = vector.broadcast %cst_11 : f32 to vector<16x128xf32>
    %16 = arith.maximumf %14, %15 : vector<16x128xf32>
    %17 = arith.truncf %16 : vector<16x128xf32> to vector<16x128xbf16>
    %c0_12 = arith.constant 0 : index
    %c0_13 = arith.constant 0 : index
    %18 = vector.load %arg6[%c0_12, %c0_13] : memref<128x128xbf16, #tpu.memory_space<vmem>>, vector<128x128xbf16>
    %cst_14 = arith.constant dense<0.000000e+00> : vector<16x128xf32>
    %19 = tpu.matmul %17, %18, %cst_14 {dimension_numbers = #tpu.dot_dimension_numbers<[1], [0], [0], [1], [0, 0, 1, 1], [], []>} : vector<16x128xbf16>, vector<128x128xbf16>, vector<16x128xf32> -> vector<16x128xf32>
    %c0_15 = arith.constant 0 : index
    %c0_16 = arith.constant 0 : index
    %20 = vector.load %arg7[%c0_15, %c0_16] : memref<1x128xf32, #tpu.memory_space<vmem>>, vector<1x128xf32>
    %21 = vector.broadcast %20 : vector<1x128xf32> to vector<16x128xf32>
    %22 = arith.addf %19, %21 : vector<16x128xf32>
    %cst_17 = arith.constant 0.000000e+00 : f32
    %23 = vector.broadcast %cst_17 : f32 to vector<16x128xf32>
    %24 = arith.maximumf %22, %23 : vector<16x128xf32>
    %25 = arith.truncf %24 : vector<16x128xf32> to vector<16x128xbf16>
    %c0_18 = arith.constant 0 : index
    %c0_19 = arith.constant 0 : index
    %26 = vector.load %arg8[%c0_18, %c0_19] : memref<128x128xbf16, #tpu.memory_space<vmem>>, vector<128x128xbf16>
    %cst_20 = arith.constant dense<0.000000e+00> : vector<16x128xf32>
    %27 = tpu.matmul %25, %26, %cst_20 {dimension_numbers = #tpu.dot_dimension_numbers<[1], [0], [0], [1], [0, 0, 1, 1], [], []>} : vector<16x128xbf16>, vector<128x128xbf16>, vector<16x128xf32> -> vector<16x128xf32>
    %c0_21 = arith.constant 0 : index
    %c0_22 = arith.constant 0 : index
    %28 = vector.load %arg9[%c0_21, %c0_22] : memref<1x128xf32, #tpu.memory_space<vmem>>, vector<1x128xf32>
    %29 = vector.broadcast %28 : vector<1x128xf32> to vector<16x128xf32>
    %30 = arith.addf %27, %29 : vector<16x128xf32>
    %31 = arith.truncf %30 : vector<16x128xf32> to vector<16x128xbf16>
    %c0_23 = arith.constant 0 : index
    %c0_24 = arith.constant 0 : index
    %32 = vector.load %arg10[%c0_23, %c0_24] : memref<16x128xbf16, #tpu.memory_space<vmem>>, vector<16x128xbf16>
    tpu.vector_store %arg10[%c0_23, %c0_24], %31 {strides = array<i32>} : memref<16x128xbf16, #tpu.memory_space<vmem>>, vector<16x128xbf16>,
    return
  }
  func.func @transform_0(%arg0: i32) -> (i32, i32) {
    %c0_i32 = arith.constant 0 : i32
    %c0_i32_0 = arith.constant 0 : i32
    return %arg0, %c0_i32 : i32, i32
  }
  func.func @transform_1(%arg0: i32) -> (i32, i32) {
    %c0_i32 = arith.constant 0 : i32
    %c0_i32_0 = arith.constant 0 : i32
    %c0_i32_1 = arith.constant 0 : i32
    return %c0_i32, %c0_i32_0 : i32, i32
  }
  func.func @transform_2(%arg0: i32) -> (i32, i32) {
    %c0_i32 = arith.constant 0 : i32
    %c0_i32_0 = arith.constant 0 : i32
    %c0_i32_1 = arith.constant 0 : i32
    return %c0_i32, %c0_i32_0 : i32, i32
  }
  func.func @transform_3(%arg0: i32) -> (i32, i32) {
    %c0_i32 = arith.constant 0 : i32
    %c0_i32_0 = arith.constant 0 : i32
    %c0_i32_1 = arith.constant 0 : i32
    return %c0_i32, %c0_i32_0 : i32, i32
  }
  func.func @transform_4(%arg0: i32) -> (i32, i32) {
    %c0_i32 = arith.constant 0 : i32
    %c0_i32_0 = arith.constant 0 : i32
    %c0_i32_1 = arith.constant 0 : i32
    return %c0_i32, %c0_i32_0 : i32, i32
  }
  func.func @transform_5(%arg0: i32) -> (i32, i32) {
    %c0_i32 = arith.constant 0 : i32
    %c0_i32_0 = arith.constant 0 : i32
    %c0_i32_1 = arith.constant 0 : i32
    return %c0_i32, %c0_i32_0 : i32, i32
  }
  func.func @transform_6(%arg0: i32) -> (i32, i32) {
    %c0_i32 = arith.constant 0 : i32
    %c0_i32_0 = arith.constant 0 : i32
    %c0_i32_1 = arith.constant 0 : i32
    return %c0_i32, %c0_i32_0 : i32, i32
  }
  func.func @transform_7(%arg0: i32) -> (i32, i32) {
    %c0_i32 = arith.constant 0 : i32
    %c0_i32_0 = arith.constant 0 : i32
    %c0_i32_1 = arith.constant 0 : i32
    return %c0_i32, %c0_i32_0 : i32, i32
  }
  func.func @transform_8(%arg0: i32) -> (i32, i32) {
    %c0_i32 = arith.constant 0 : i32
    %c0_i32_0 = arith.constant 0 : i32
    %c0_i32_1 = arith.constant 0 : i32
    return %c0_i32, %c0_i32_0 : i32, i32
  }
  func.func @transform_9(%arg0: i32) -> (i32, i32) {
    %c0_i32 = arith.constant 0 : i32
    %c0_i32_0 = arith.constant 0 : i32
    return %arg0, %c0_i32 : i32, i32
  }
}

</mosaic_0001>

<bundles_post_ra>
// kernel: tpu_custom_call.1
= control target key start
LH: loop header
LB: loop body
LE: loop exit
PB: predicated region body
PF: predicated region fallthrough
CT: control target
= control target key end

     0   :  { %14 = vsyncpa [#allocation3], 0  ;;  %s2291_s0 = inlined_call_operand.hbm [shape: f32[2,784], index: 0, kind: input, shape index: {}]   ;;  %s2292_s1 = inlined_call_operand.hbm [shape: bf16[784,256], index: 1, kind: input, shape index: {}]   ;;  %s2293_s2 = inlined_call_operand.vmem [shape: f32[1,256], index: 2, kind: input, shape index: {}]   ;;  %s2294_s3 = inlined_call_operand.hbm [shape: bf16[256,128], index: 3, kind: input, shape index: {}]   ;;  %s2295_s4 = inlined_call_operand.vmem [shape: f32[1,128], index: 4, kind: input, shape index: {}]   ;;  %s2296_s5 = inlined_call_operand.hbm [shape: bf16[128,128], index: 5, kind: input, shape index: {}]   ;;  %s2297_s6 = inlined_call_operand.vmem [shape: f32[1,128], index: 6, kind: input, shape index: {}]   ;;  %s2298_s7 = inlined_call_operand.hbm [shape: bf16[128,128], index: 7, kind: input, shape index: {}]   ;;  %s2299_s8 = inlined_call_operand.vmem [shape: f32[1,128], index: 8, kind: input, shape index: {}]   ;;  %s2300_s9 = inlined_call_operand.hbm [shape: bf16[2,128], index: 9, kind: output, shape index: {}]  }
   0x1   :  { %15 = vsyncpa [#allocation6], 0 }
   0x2   :  { %16 = vsyncpa [#allocation9], 0 }
   0x3   :  { %17 = vsyncpa [#allocation4], 0 }
   0x4   :  { %22 = vsyncadd [#allocation3], 1568  ;;  %s2140_s30 = smov [#allocation5]  }
   0x5   :  { %s35_s10 = sshll.u32 %s2140_s30, 4  ;;  %s36_s10 = int_to_ptr.vmem [resolvable:$true] %s35_s10 }
   0x6   :  { %s2020_s11 = scalar_lea.vmem %s36_s10, 12544  ;;  %p2025_p1 = scmp.lt.s32.totalorder %s36_s10, %s36_s10 }
   0x7   :  { %p2021_p0 = scmp.ne.s32.totalorder %s36_s10, %s2020_s11  ;;  %p2026_p2 = scmp.lt.s32.totalorder %s2020_s11, %s2020_s11 }
   0x9   :  { %p2027_p3 = por %p2026_p2, %p2025_p1 }
   0xb   :  { %p2028_p4 = pnand %p2027_p3, %p2021_p0 }
   0xd   :  { %2031 = shalt.err (!%p2028_p4)
}
   0xe   :  { %s2141_s12 = smov 128   ;;  %s2142_s13 = smov 8  }
   0xf   :  { %41 = dma.hbm_to_vmem [thread:$0]  %s2292_s1, 12544, %s36_s10, [#allocation6], %s2141_s12, %s2141_s12, %s2142_s13  }
  0x10   :  { %s2143_s16 = smov [#allocation8]   ;;  %s2144_s18 = smov [#allocation2]  }
  0x11   :  { %s63_s17 = sshll.u32 %s2143_s16, 4  ;;  %s23_s19 = sshll.u32 %s2144_s18, 4  ;;  %s64_s17 = int_to_ptr.vmem [resolvable:$true] %s63_s17  ;;  %s24_s19 = int_to_ptr.vmem [resolvable:$true] %s23_s19 }
  0x12   :  { %s2040_s20 = scalar_lea.vmem %s64_s17, 1024  ;;  %p2045_p6 = scmp.lt.s32.totalorder %s64_s17, %s64_s17 }
  0x13   :  { %p2041_p5 = scmp.ne.s32.totalorder %s64_s17, %s2040_s20  ;;  %p2046_p7 = scmp.lt.s32.totalorder %s2040_s20, %s2040_s20 }
  0x15   :  { %p2047_p8 = por %p2046_p7, %p2045_p6 }
  0x17   :  { %p2048_p9 = pnand %p2047_p8, %p2041_p5 }
  0x19   :  { %2051 = shalt.err (!%p2048_p9)
}
  0x1a   :  { %s2145_s21 = smov 64   ;;  %s2146_s22 = smov 4  }
  0x1b   :  { %69 = dma.hbm_to_vmem [thread:$0]  %s2296_s5, 1024, %s64_s17, [#allocation9], %s2145_s21, %s2145_s21, %s2146_s22  }
  0x1c   :  { %s2060_s1 = scalar_lea.vmem %s24_s19, 224  ;;  %s2064_s25 = scalar_lea.vmem %s24_s19, 1792 }
  0x1d   :  { %p2061_p10 = scmp.ne.s32.totalorder %s24_s19, %s2060_s1  ;;  %p2065_p11 = scmp.lt.s32.totalorder %s24_s19, %s24_s19 }
  0x1e   :  { %p2066_p12 = scmp.lt.s32.totalorder %s2064_s25, %s2060_s1 }
  0x20   :  { %p2067_p13 = por %p2066_p12, %p2065_p11 }
  0x22   :  { %p2068_p0 = pnand %p2067_p13, %p2061_p10 }
  0x24   :  { %2071 = shalt.err (!%p2068_p0)
}
  0x25   :  { %s2147_s26 = smov 224   ;;  %s2148_s27 = smov 14  }
  0x26   :  { %29 = dma.hbm_to_vmem [thread:$0]  %s2291_s0, 224, %s24_s19, [#allocation3], %s2147_s26, %s2147_s26, %s2148_s27  }
  0x27   :  { %s2149_s30 = smov [#allocation7]   ;;  %s2150_s11 = smov [#allocation10]  }
  0x28   :  { %s49_s10 = sshll.u32 %s2149_s30, 4  ;;  %s77_s5 = sshll.u32 %s2150_s11, 4  ;;  %s50_s10 = int_to_ptr.vmem [resolvable:$true] %s49_s10  ;;  %s78_s5 = int_to_ptr.vmem [resolvable:$true] %s77_s5 }
  0x29   :  { %s2080_s12 = scalar_lea.vmem %s50_s10, 2048  ;;  %p2085_p2 = scmp.lt.s32.totalorder %s50_s10, %s50_s10 }
  0x2a   :  { %p2081_p1 = scmp.ne.s32.totalorder %s50_s10, %s2080_s12  ;;  %p2086_p3 = scmp.lt.s32.totalorder %s2080_s12, %s2080_s12 }
  0x2c   :  { %p2087_p4 = por %p2086_p3, %p2085_p2 }
  0x2e   :  { %p2088_p5 = pnand %p2087_p4, %p2081_p1 }
  0x30   :  { %2091 = shalt.err (!%p2088_p5)
}
  0x31   :  { %55 = dma.hbm_to_vmem [thread:$0]  %s2294_s3, 2048, %s50_s10, [#allocation6], %s2145_s21, %s2145_s21, %s2146_s22  }
  0x32   :  { %s2100_s0 = scalar_lea.vmem %s78_s5, 1024  ;;  %p2105_p7 = scmp.lt.s32.totalorder %s78_s5, %s78_s5 }
  0x33   :  { %p2101_p6 = scmp.ne.s32.totalorder %s78_s5, %s2100_s0  ;;  %p2106_p8 = scmp.lt.s32.totalorder %s2100_s0, %s2100_s0 }
  0x35   :  { %p2107_p9 = por %p2106_p8, %p2105_p7 }
  0x37   :  { %p2108_p10 = pnand %p2107_p9, %p2101_p6 }
  0x39   :  { %2111 = shalt.err (!%p2108_p10)
}
  0x3a   :  { %83 = dma.hbm_to_vmem [thread:$0]  %s2298_s7, 1024, %s78_s5, [#allocation9], %s2145_s21, %s2145_s21, %s2146_s22  }
  0x3b   :  { %2132 = dma.done.wait [#allocation3], 1792  }
  0x3c   :  { %2133 = vsyncadd [#allocation3], 4294965504 }
  0x3d   :  { %2134 = dma.done.wait [#allocation6], 14592  }
  0x3e   :  { %2135 = vsyncadd [#allocation6], 4294952704 }
  0x3f   :  { %2136 = dma.done.wait [#allocation9], 2048  }
  0x40   :  { %2137 = vsyncadd [#allocation9], 4294965248  ;;  %v1809_v0 = vld [vmem:[#allocation5 + $0x74] ss:$8 sps:$4 sm:$0xff]   ;;  %v1811_v1 = vld [vmem:[#allocation5 + $0x70] ss:$8 sps:$4 sm:$0xff]   ;;  %v141_v41 = vlaneseq }
  0x41   :  { %901 = vmatprep.subr.bf16.mxu0 %v1809_v0  ;;  %v1812_v2 = vld [vmem:[#allocation5 + $0x174] ss:$8 sps:$4 sm:$0xff]   ;;  %v1814_v3 = vld [vmem:[#allocation5 + $0x170] ss:$8 sps:$4 sm:$0xff]   ;;  %v1815_v4 = vld [vmem:[#allocation5 + $0x64] ss:$8 sps:$4 sm:$0xff]  }
  0x42   :  { %902 = vmatpush1.bf16.msra.mxu0 %v1811_v1  ;;  %v1817_v5 = vld [vmem:[#allocation5 + $0x60] ss:$8 sps:$4 sm:$0xff]   ;;  %944 = vmatprep.subr.bf16.mxu1 %v1812_v2  ;;  %v1818_v6 = vld [vmem:[#allocation5 + $0x164] ss:$8 sps:$4 sm:$0xff]   ;;  %v1821_v8 = vld [vmem:[#allocation5 + $0x54] ss:$8 sps:$4 sm:$0xff]  }
  0x43   :  { %945 = vmatpush1.bf16.msra.mxu1 %v1814_v3  ;;  %903 = vmatprep.subr.bf16.mxu0 %v1815_v4  ;;  %v1820_v7 = vld [vmem:[#allocation5 + $0x160] ss:$8 sps:$4 sm:$0xff]   ;;  %v1823_v9 = vld [vmem:[#allocation5 + $0x50] ss:$8 sps:$4 sm:$0xff]   ;;  %v1824_v10 = vld [vmem:[#allocation5 + $0x154] ss:$8 sps:$4 sm:$0xff]  }
  0x44   :  { %946 = vmatprep.subr.bf16.mxu1 %v1818_v6  ;;  %v1827_v11 = vld [vmem:[#allocation5 + $0x44] ss:$8 sps:$4 sm:$0xff]   ;;  %v1826_v12 = vld [vmem:[#allocation5 + $0x150] ss:$8 sps:$4 sm:$0xff]   ;;  %v1829_v14 = vld [vmem:[#allocation5 + $0x40] ss:$8 sps:$4 sm:$0xff]  }
  0x45   :  { %v1830_v13 = vld [vmem:[#allocation5 + $0x144] ss:$8 sps:$4 sm:$0xff]   ;;  %v1833_v15 = vld [vmem:[#allocation5 + $0x34] ss:$8 sps:$4 sm:$0xff]   ;;  %v1832_v16 = vld [vmem:[#allocation5 + $0x140] ss:$8 sps:$4 sm:$0xff]  }
  0x46   :  { %904 = vmatpush1.bf16.msra.mxu0 %v1817_v5  ;;  %v1836_v17 = vld [vmem:[#allocation5 + $0x134] ss:$8 sps:$4 sm:$0xff]   ;;  %v1835_v18 = vld [vmem:[#allocation5 + $0x30] ss:$8 sps:$4 sm:$0xff]   ;;  %v1839_v19 = vld [vmem:[#allocation5 + $0x24] ss:$8 sps:$4 sm:$0xff]  }
  0x47   :  { %905 = vmatprep.subr.bf16.mxu0 %v1821_v8  ;;  %947 = vmatpush1.bf16.msra.mxu1 %v1820_v7  ;;  %v1838_v20 = vld [vmem:[#allocation5 + $0x130] ss:$8 sps:$4 sm:$0xff]   ;;  %v1842_v21 = vld [vmem:[#allocation5 + $0x124] ss:$8 sps:$4 sm:$0xff]   ;;  %v1841_v22 = vld [vmem:[#allocation5 + $0x20] ss:$8 sps:$4 sm:$0xff]  }
  0x48   :  { %948 = vmatprep.subr.bf16.mxu1 %v1824_v10  ;;  %v1845_v23 = vld [vmem:[#allocation5 + $0x14] ss:$8 sps:$4 sm:$0xff]   ;;  %v1844_v24 = vld [vmem:[#allocation5 + $0x120] ss:$8 sps:$4 sm:$0xff]   ;;  %v1847_v26 = vld [vmem:[#allocation5 + $0x10] ss:$8 sps:$4 sm:$0xff]  }
  0x49   :  { %v1848_v25 = vld [vmem:[#allocation5 + $0x114] ss:$8 sps:$4 sm:$0xff]   ;;  %v1851_v27 = vld [vmem:[#allocation5 + $0x4] ss:$8 sps:$4 sm:$0xff]   ;;  %v1850_v28 = vld [vmem:[#allocation5 + $0x110] ss:$8 sps:$4 sm:$0xff]  }
  0x4a   :  { %906 = vmatpush1.bf16.msra.mxu0 %v1823_v9  ;;  %v1854_v29 = vld [vmem:[#allocation5 + $0x104] ss:$8 sps:$4 sm:$0xff]   ;;  %v1853_v30 = vld [vmem:[#allocation5] ss:$8 sps:$4 sm:$0xff]   ;;  %v1857_v31 = vld [vmem:[#allocation5 + $0xf4] ss:$8 sps:$4 sm:$0xff]  }
  0x4b   :  { %907 = vmatprep.subr.bf16.mxu0 %v1827_v11  ;;  %949 = vmatpush1.bf16.msra.mxu1 %v1826_v12  ;;  %v1856_v32 = vld [vmem:[#allocation5 + $0x100] ss:$8 sps:$4 sm:$0xff]   ;;  %v1860_v33 = vld [vmem:[#allocation5 + $0x1f4] ss:$8 sps:$4 sm:$0xff]   ;;  %v1859_v34 = vld [vmem:[#allocation5 + $0xf0] ss:$8 sps:$4 sm:$0xff]  }
  0x4c   :  { %950 = vmatprep.subr.bf16.mxu1 %v1830_v13  ;;  %v1863_v35 = vld [vmem:[#allocation5 + $0xe4] ss:$8 sps:$4 sm:$0xff]   ;;  %v1862_v36 = vld [vmem:[#allocation5 + $0x1f0] ss:$8 sps:$4 sm:$0xff]   ;;  %v1865_v38 = vld [vmem:[#allocation5 + $0xe0] ss:$8 sps:$4 sm:$0xff]  }
  0x4d   :  { %v1866_v37 = vld [vmem:[#allocation5 + $0x1e4] ss:$8 sps:$4 sm:$0xff]   ;;  %v2151_v39 = vmov 1983009808   ;;  %v1869_v42 = vld [vmem:[#allocation5 + $0xd4] ss:$8 sps:$4 sm:$0xff]  }
  0x4e   :  { %908 = vmatpush1.bf16.msra.mxu0 %v1829_v14  ;;  %v139_v40 = vunpack.c.l.s4 %v2151_v39  ;;  %v1868_v43 = vld [vmem:[#allocation5 + $0x1e0] ss:$8 sps:$4 sm:$0xff]   ;;  %v1872_v44 = vld [vmem:[#allocation5 + $0x1d4] ss:$8 sps:$4 sm:$0xff]   ;;  %v1871_v45 = vld [vmem:[#allocation5 + $0xd0] ss:$8 sps:$4 sm:$0xff]  }
  0x4f   :  { %909 = vmatprep.subr.bf16.mxu0 %v1833_v15  ;;  %951 = vmatpush1.bf16.msra.mxu1 %v1832_v16  ;;  %v1874_v46 = vld [vmem:[#allocation5 + $0x1d0] ss:$8 sps:$4 sm:$0xff]   ;;  %v2233_v48 = vshrl.u32 %v141_v41, 7  ;;  %v1875_v49 = vld [vmem:[#allocation5 + $0xc4] ss:$8 sps:$4 sm:$0xff]   ;;  %v2152_v41 = vmov 0  }
  0x50   :  { %952 = vmatprep.subr.bf16.mxu1 %v1836_v17  ;;  %v140_v47 = vunpack.c.0.s8 %v139_v40  ;;  %v1877_v50 = vld [vmem:[#allocation5 + $0xc0] ss:$8 sps:$4 sm:$0xff]   ;;  %v1878_v51 = vld [vmem:[#allocation5 + $0x1c4] ss:$8 sps:$4 sm:$0xff]   ;;  %v1881_v52 = vld [vmem:[#allocation5 + $0xb4] ss:$8 sps:$4 sm:$0xff]  }
  0x51   :  { %v1880_v53 = vld [vmem:[#allocation5 + $0x1c0] ss:$8 sps:$4 sm:$0xff]   ;;  %v1883_v55 = vld [vmem:[#allocation5 + $0xb0] ss:$8 sps:$4 sm:$0xff]   ;;  %v1884_v59 = vld [vmem:[#allocation5 + $0x1b4] ss:$8 sps:$4 sm:$0xff]  }
  0x52   :  { %910 = vmatpush1.bf16.msra.mxu0 %v1835_v18  ;;  %v2236_v54 = vsub.s32 %v140_v47, %v2233_v48  ;;  %v1904_v56 = vld [vmem:[#allocation2] ss:$14 sps:$4 sm:$0xff]   ;;  %v1906_v57 = vld [vmem:[#allocation2 + $0x1c] ss:$14 sps:$4 sm:$0xff]   ;;  %v1908_v58 = vld [vmem:[#allocation2 + $0x38] ss:$14 sps:$4 sm:$0xff]  }
  0x53   :  { %911 = vmatprep.subr.bf16.mxu0 %v1839_v19  ;;  %953 = vmatpush1.bf16.msra.mxu1 %v1838_v20  ;;  %v1910_v60 = vld [vmem:[#allocation2 + $0x54] ss:$14 sps:$4 sm:$0xff]   ;;  %v1918_v5 = vld [vmem:[#allocation2 + $0x3c] ss:$14 sps:$4 sm:$0xff]   ;;  %v1919_v7 = vld [vmem:[#allocation2 + $0x58] ss:$14 sps:$4 sm:$0xff]  }
  0x54   :  { %954 = vmatprep.subr.bf16.mxu1 %v1842_v21  ;;  %v1886_v61 = vld [vmem:[#allocation5 + $0x1b0] ss:$8 sps:$4 sm:$0xff]   ;;  %v1887_v62 = vld [vmem:[#allocation5 + $0xa4] ss:$8 sps:$4 sm:$0xff]   ;;  %v144_v63 = vrot.slane %v1904_v56, %v2236_v54  ;;  %v158_v0 = vrot.slane %v1906_v57, %v2236_v54  ;;  %v215_v1 = vrot.slane %v1908_v58, %v2236_v54  ;;  %v229_v2 = vrot.slane %v1910_v60, %v2236_v54  ;;  %v1889_v12 = vld [vmem:[#allocation5 + $0xa0] ss:$8 sps:$4 sm:$0xff]  }
  0x55   :  { %v1916_v3 = vld [vmem:[#allocation2 + $0x4] ss:$14 sps:$4 sm:$0xff]   ;;  %v1917_v4 = vld [vmem:[#allocation2 + $0x20] ss:$14 sps:$4 sm:$0xff]   ;;  %v222_v13 = vrot.slane %v1918_v5, %v2236_v54  ;;  %v236_v14 = vrot.slane %v1919_v7, %v2236_v54  ;;  %vm897_vm0 = vcmask 130048   ;;  %vm2154_vm1 = vmmov 0  }
  0x56   :  { %912 = vmatpush1.bf16.msra.mxu0 %v1841_v22  ;;  %v167_v6 = vcombine.high %v144_v63, %v158_v0  ;;  %v1890_v8 = vld [vmem:[#allocation5 + $0x1a4] ss:$8 sps:$4 sm:$0xff]   ;;  %v238_v9 = vcombine.high %v215_v1, %v229_v2  ;;  %v151_v10 = vrot.slane %v1916_v3, %v2236_v54  ;;  %v165_v11 = vrot.slane %v1917_v4, %v2236_v54  ;;  %v1893_v15 = vld [vmem:[#allocation5 + $0x94] ss:$8 sps:$4 sm:$0xff]   ;;  %v1892_v18 = vld [vmem:[#allocation5 + $0x1a0] ss:$8 sps:$4 sm:$0xff]  }
  0x57   :  { %913 = vmatprep.subr.bf16.mxu0 %v1845_v23  ;;  %955 = vmatpush1.bf16.msra.mxu1 %v1844_v24  ;;  %v240_v19 = vcombine.high %v222_v13, %v236_v14  ;;  %v1896_v20 = vld [vmem:[#allocation5 + $0x194] ss:$8 sps:$4 sm:$0xff]   ;;  %v1895_v21 = vld [vmem:[#allocation5 + $0x90] ss:$8 sps:$4 sm:$0xff]   ;;  %v1899_v23 = vld [vmem:[#allocation5 + $0x84] ss:$8 sps:$4 sm:$0xff]  }
  0x58   :  { %956 = vmatprep.subr.bf16.mxu1 %v1848_v25  ;;  %v291_v16 = vpack.c.bf16 %v238_v9, %v167_v6  ;;  %v169_v17 = vcombine.high %v151_v10, %v165_v11  ;;  %v1898_v24 = vld [vmem:[#allocation5 + $0x190] ss:$8 sps:$4 sm:$0xff]   ;;  %v1902_v25 = vld [vmem:[#allocation5 + $0x184] ss:$8 sps:$4 sm:$0xff]   ;;  %v1962_v39 = vld [vmem:[#allocation5 + $0x300] ss:$8 sps:$4 sm:$0xff]  }
  0x59   :  { %v1964_v40 = vld [vmem:[#allocation5 + $0x304] ss:$8 sps:$4 sm:$0xff]   ;;  %v1978_v57 = vld [vmem:[#allocation2 + $0x40] ss:$14 sps:$4 sm:$0xff]  }
  0x5a   :  { %914 = vmatpush1.bf16.msra.mxu0 %v1847_v26  ;;  %933 = vmatprep.mubr.bf16.mxu0 %v291_v16  ;;  %v293_v22 = vpack.c.bf16 %v240_v19, %v169_v17  ;;  %v166_v26 = vcombine.low %v144_v63, %v158_v0  ;;  %v1970_v47 = vld [vmem:[#allocation2 + $0x28] ss:$14 sps:$4 sm:$0x33]   ;;  %v1977_v56 = vld [vmem:[#allocation2 + $0x24] ss:$14 sps:$4 sm:$0xff]  }
  0x5b   :  { %915 = vmatprep.subr.bf16.mxu0 %v1851_v27  ;;  %957 = vmatpush1.bf16.msra.mxu1 %v1850_v28  ;;  %v237_v27 = vcombine.low %v215_v1, %v229_v2  ;;  %v1901_v28 = vld [vmem:[#allocation5 + $0x80] ss:$8 sps:$4 sm:$0xff]   ;;  %v1979_v58 = vld [vmem:[#allocation2 + $0x5c] ss:$14 sps:$4 sm:$0xff]   ;;  %v194_v0 = vrot.slane %v1977_v56, %v2236_v54  ;;  %v251_v1 = vrot.slane %v1978_v57, %v2236_v54 }
  0x5c   :  { %958 = vmatprep.subr.bf16.mxu1 %v1854_v29  ;;  %976 = vmatprep.mubr.bf16.mxu1 %v293_v22  ;;  %v1915_v29 = vld [vmem:[#allocation5 + $0x274] ss:$8 sps:$4 sm:$0xff]   ;;  %v265_v2 = vrot.slane %v1979_v58, %v2236_v54  ;;  %v1932_v6 = vld [vmem:[#allocation5 + $0x220] ss:$8 sps:$4 sm:$0xff]   ;;  %v1947_v17 = vld [vmem:[#allocation5 + $0x2d0] ss:$8 sps:$4 sm:$0xff]  }
  0x5d   :  { %v1949_v16 = vld [vmem:[#allocation5 + $0x2d4] ss:$8 sps:$4 sm:$0xff]   ;;  %v1950_v19 = vld [vmem:[#allocation5 + $0x2c0] ss:$8 sps:$4 sm:$0xff]   ;;  %v1958_v22 = vld [vmem:[#allocation5 + $0x2a4] ss:$8 sps:$4 sm:$0xff]  }
  0x5e   :  { %916 = vmatpush1.bf16.msra.mxu0 %v1853_v30  ;;  %v168_v30 = vcombine.low %v151_v10, %v165_v11  ;;  %v274_v5 = vcombine.high %v251_v1, %v265_v2  ;;  %v1935_v10 = vld [vmem:[#allocation5 + $0x210] ss:$8 sps:$4 sm:$0xff]   ;;  %v1940_v11 = vld [vmem:[#allocation5 + $0x204] ss:$8 sps:$4 sm:$0xff]  }
  0x5f   :  { %917 = vmatprep.subr.bf16.mxu0 %v1857_v31  ;;  %959 = vmatpush1.bf16.msra.mxu1 %v1856_v32  ;;  %v239_v31 = vcombine.low %v222_v13, %v236_v14  ;;  %v1912_v32 = vld [vmem:[#allocation5 + $0x180] ss:$8 sps:$4 sm:$0xff]   ;;  %v1941_v13 = vld [vmem:[#allocation5 + $0x2f0] ss:$8 sps:$4 sm:$0xff]   ;;  %v1946_v14 = vld [vmem:[#allocation5 + $0x2e4] ss:$8 sps:$4 sm:$0xff]  }
  0x60   :  { %960 = vmatprep.subr.bf16.mxu1 %v1860_v33  ;;  %v290_v33 = vpack.c.bf16 %v237_v27, %v166_v26  ;;  %v1967_v26 = vld [vmem:[#allocation5 + $0x284] ss:$8 sps:$4 sm:$0xff]  }
  0x62   :  { %918 = vmatpush2.bf16.msra.mxu0 %v1859_v34  ;;  %v1913_v34 = vld [vmem:[#allocation5 + $0x270] ss:$8 sps:$4 sm:$0xff]  }
  0x63   :  { %919 = vmatprep.subr.bf16.mxu0 %v1863_v35  ;;  %961 = vmatpush2.bf16.msra.mxu1 %v1862_v36  ;;  %v292_v35 = vpack.c.bf16 %v239_v31, %v168_v30  ;;  %v1922_v36 = vld [vmem:[#allocation5 + $0x264] ss:$8 sps:$4 sm:$0xff]  }
  0x64   :  { %962 = vmatprep.subr.bf16.mxu1 %v1866_v37  ;;  %v1920_v37 = vld [vmem:[#allocation5 + $0x260] ss:$8 sps:$4 sm:$0xff]  }
  0x65   :  { %v1980_v31 = vld [vmem:[#allocation7 + $0x78] sm:$0xff]  }
  0x66   :  { %920 = vmatpush2.bf16.msra.mxu0 %v1865_v38  ;;  %v1925_v38 = vld [vmem:[#allocation5 + $0x254] ss:$8 sps:$4 sm:$0xff]  }
  0x67   :  { %921 = vmatprep.subr.bf16.mxu0 %v1869_v42  ;;  %963 = vmatpush2.bf16.msra.mxu1 %v1868_v43  ;;  %v1923_v42 = vld [vmem:[#allocation5 + $0x250] ss:$8 sps:$4 sm:$0xff]   ;;  %v1928_v43 = vld [vmem:[#allocation5 + $0x244] ss:$8 sps:$4 sm:$0xff]  }
  0x68   :  { %964 = vmatprep.subr.bf16.mxu1 %v1872_v44  ;;  %v1926_v44 = vld [vmem:[#allocation5 + $0x240] ss:$8 sps:$4 sm:$0xff]  }
  0x6a   :  { %922 = vmatpush2.bf16.msra.mxu0 %v1871_v45  ;;  %v1968_v45 = vld [vmem:[#allocation2 + $0xc] ss:$14 sps:$4 sm:$0x33]  }
  0x6b   :  { %923 = vmatprep.subr.bf16.mxu0 %v1875_v49  ;;  %965 = vmatpush2.bf16.msra.mxu1 %v1874_v46  ;;  %v1931_v46 = vld [vmem:[#allocation5 + $0x234] ss:$8 sps:$4 sm:$0xff]  }
  0x6c   :  { %966 = vmatprep.subr.bf16.mxu1 %v1878_v51  ;;  %v1972_v49 = vld [vmem:[#allocation2 + $0x44] ss:$14 sps:$4 sm:$0x33]   ;;  %v1974_v51 = vld [vmem:[#allocation2 + $0x60] ss:$14 sps:$4 sm:$0x33]  }
  0x6d   :  { %v272_v60 = vrot.slane %v1974_v51, %v2236_v54 }
  0x6e   :  { %924 = vmatpush2.bf16.msra.mxu0 %v1877_v50  ;;  %v187_v50 = vrot.slane %v1968_v45, %v2236_v54  ;;  %v1994_v45 = vld [vmem:[#allocation7 + $0x40] sm:$0xff]  }
  0x6f   :  { %925 = vmatprep.subr.bf16.mxu0 %v1881_v52  ;;  %967 = vmatpush2.bf16.msra.mxu1 %v1880_v53  ;;  %v1976_v52 = vld [vmem:[#allocation2 + $0x8] ss:$14 sps:$4 sm:$0xff]   ;;  %v201_v53 = vrot.slane %v1970_v47, %v2236_v54  ;;  %v2153_v47 = vmov 0.0  }
  0x70   :  { %968 = vmatprep.subr.bf16.mxu1 %v1884_v59  ;;  %v1929_v59 = vld [vmem:[#allocation5 + $0x230] ss:$8 sps:$4 sm:$0xff]  }
  0x71   :  { %v204_v63 = vcombine.low %v187_v50, %v201_v53  ;;  %v395_v53 = vld [vmem:[%s2293_s2] sm:$0x3] }
  0x72   :  { %926 = vmatpush2.bf16.msra.mxu0 %v1883_v55  ;;  %v258_v55 = vrot.slane %v1972_v49, %v2236_v54 }
  0x73   :  { %927 = vmatprep.subr.bf16.mxu0 %v1887_v62  ;;  %969 = vmatpush2.bf16.msra.mxu1 %v1886_v61  ;;  %v180_v61 = vrot.slane %v1976_v52, %v2236_v54  ;;  %v1934_v62 = vld [vmem:[#allocation5 + $0x224] ss:$8 sps:$4 sm:$0xff]   ;;  %v1943_v54 = vld [vmem:[#allocation5 + $0x2f4] ss:$8 sps:$4 sm:$0xff]   ;;  %v403_v52 = vsub.s32 1, %v2233_v48 }
  0x74   :  { %970 = vmatprep.subr.bf16.mxu1 %v1890_v8  ;;  %v275_v3 = vcombine.low %v258_v55, %v272_v60  ;;  %v1937_v8 = vld [vmem:[#allocation5 + $0x214] ss:$8 sps:$4 sm:$0xff]   ;;  %v399_v55 = vsub.s32 0, %v2233_v48 }
  0x75   :  { %v203_v4 = vcombine.high %v180_v61, %v194_v0  ;;  %v202_v27 = vcombine.low %v180_v61, %v194_v0  ;;  %v404_v58 = vrot.slane %v395_v53, %v403_v52 }
  0x76   :  { %928 = vmatpush2.bf16.msra.mxu0 %v1889_v12  ;;  %v296_v7 = vpack.c.bf16 %v275_v3, %v204_v63  ;;  %v1938_v12 = vld [vmem:[#allocation5 + $0x200] ss:$8 sps:$4 sm:$0xff]  }
  0x77   :  { %929 = vmatprep.subr.bf16.mxu0 %v1893_v15  ;;  %971 = vmatpush2.bf16.msra.mxu1 %v1892_v18  ;;  %v295_v9 = vpack.c.bf16 %v274_v5, %v203_v4  ;;  %v1944_v15 = vld [vmem:[#allocation5 + $0x2e0] ss:$8 sps:$4 sm:$0xff]   ;;  %v1952_v18 = vld [vmem:[#allocation5 + $0x2c4] ss:$8 sps:$4 sm:$0xff]  }
  0x78   :  { %972 = vmatprep.subr.bf16.mxu1 %v1896_v20  ;;  %v1955_v20 = vld [vmem:[#allocation5 + $0x2b4] ss:$8 sps:$4 sm:$0xff]  }
  0x7a   :  { %930 = vmatpush2.bf16.msra.mxu0 %v1895_v21  ;;  %v1953_v21 = vld [vmem:[#allocation5 + $0x2b0] ss:$8 sps:$4 sm:$0xff]  }
  0x7b   :  { %931 = vmatprep.subr.bf16.mxu0 %v1899_v23  ;;  %973 = vmatpush2.bf16.msra.mxu1 %v1898_v24  ;;  %v1956_v23 = vld [vmem:[#allocation5 + $0x2a0] ss:$8 sps:$4 sm:$0xff]   ;;  %v1961_v24 = vld [vmem:[#allocation5 + $0x294] ss:$8 sps:$4 sm:$0xff]  }
  0x7c   :  { %974 = vmatprep.subr.bf16.mxu1 %v1902_v25  ;;  %v1959_v25 = vld [vmem:[#allocation5 + $0x290] ss:$8 sps:$4 sm:$0xff]  }
  0x7e   :  { %932 = vmatpush2.bf16.msra.mxu0 %v1901_v28  ;;  %v273_v28 = vcombine.low %v251_v1, %v265_v2 }
  0x7f   :  { %987 = vmatprep.subr.bf16.mxu0 %v1915_v29  ;;  %975 = vmatpush2.bf16.msra.mxu1 %v1912_v32  ;;  %v1965_v29 = vld [vmem:[#allocation5 + $0x280] ss:$8 sps:$4 sm:$0xff]  }
  0x80   :  { %1044 = vmatprep.subr.bf16.mxu1 %v1964_v40  ;;  %v294_v30 = vpack.c.bf16 %v273_v28, %v202_v27  ;;  %v1981_v32 = vld [vmem:[#allocation7 + $0x38] sm:$0xff]  }
  0x81   :  { %934 = vmatmul.mubr.bf16.vlgmr.msra.gmra.mxu0 %v290_v33  ;;  %v1982_v33 = vld [vmem:[#allocation7 + $0x70] sm:$0xff]   ;;  %v1989_v40 = vld [vmem:[#allocation7 + $0x18] sm:$0xff]  }
  0x82   :  { %988 = vmatpush1.bf16.msra.mxu0 %v1913_v34  ;;  %977 = vmatmul.mubr.bf16.vlgmr.msra.gmra.mxu1 %v292_v35  ;;  %v1983_v34 = vld [vmem:[#allocation7 + $0x30] sm:$0xff]   ;;  %v1984_v35 = vld [vmem:[#allocation7 + $0x68] sm:$0xff]   ;;  %v1996_v27 = vld [vmem:[#allocation8 + $0x38] sm:$0xff]  }
  0x83   :  { %989 = vmatprep.subr.bf16.mxu0 %v1922_v36  ;;  %1062 = vmatprep.mubr.bf16.mxu1 %v2152_v41  ;;  %v1985_v36 = vld [vmem:[#allocation7 + $0x28] sm:$0xff]   ;;  %v1990_v41 = vld [vmem:[#allocation7 + $0x50] sm:$0xff]  }
  0x84   :  { %1045 = vmatpush1.bf16.msra.mxu1 %v1962_v39  ;;  %1019 = vmatprep.mubr.bf16.mxu0 %v295_v9  ;;  %v1988_v39 = vld [vmem:[#allocation7 + $0x58] sm:$0xff]  }
  0x85   :  { %1710 = vmatprep.subr.bf16.mxu1 %v1980_v31  ;;  %v1999_v31 = vld [vmem:[#allocation8 + $0x20] sm:$0xff]  }
  0x86   :  { %990 = vmatpush1.bf16.msra.mxu0 %v1920_v37  ;;  %v1986_v37 = vld [vmem:[#allocation7 + $0x60] sm:$0xff]  }
  0x87   :  { %991 = vmatprep.subr.bf16.mxu0 %v1925_v38  ;;  %v1987_v38 = vld [vmem:[#allocation7 + $0x20] sm:$0xff]  }
  0x8a   :  { %992 = vmatpush1.bf16.msra.mxu0 %v1923_v42  ;;  %1669 = vmatmul.mubr.msk.bf16.vlgmr.msra.gmra.mxu1 %vm897_vm0, %v296_v7  ;;  %v1991_v42 = vld [vmem:[#allocation7 + $0x10] sm:$0xff]  }
  0x8b   :  { %993 = vmatprep.subr.bf16.mxu0 %v1928_v43  ;;  %1711 = vmatpush3.bf16.msra.mxu1 %v1981_v32  ;;  %v1992_v43 = vld [vmem:[#allocation7 + $0x48] sm:$0xff]   ;;  %v2000_v32 = vld [vmem:[#allocation8 + $0x18] sm:$0xff]  }
  0x8c   :  { %1712 = vmatprep.subr.bf16.mxu1 %v1982_v33  ;;  %v2001_v33 = vld [vmem:[#allocation8 + $0x10] sm:$0xff]  }
  0x8e   :  { %994 = vmatpush1.bf16.msra.mxu0 %v1926_v44  ;;  %v1993_v44 = vld [vmem:[#allocation7 + $0x8] sm:$0xff]  }
  0x8f   :  { %995 = vmatprep.subr.bf16.mxu0 %v1931_v46  ;;  %1713 = vmatpush3.bf16.msra.mxu1 %v1983_v34  ;;  %v1995_v46 = vld [vmem:[#allocation7] sm:$0xff]   ;;  %v2002_v34 = vld [vmem:[#allocation8 + $0x8] sm:$0xff]  }
  0x90   :  { %1714 = vmatprep.subr.bf16.mxu1 %v1984_v35  ;;  %v2003_v35 = vld [vmem:[#allocation8] sm:$0xff]  }
  0x92   :  { %996 = vmatpush1.bf16.msra.mxu0 %v1929_v59  ;;  %v400_v59 = vrot.slane %v395_v53, %v399_v55 }
  0x93   :  { %997 = vmatprep.subr.bf16.mxu0 %v1934_v62  ;;  %1715 = vmatpush3.bf16.msra.mxu1 %v1985_v36  ;;  %v2004_v36 = vld [vmem:[#allocation10 + $0x38] sm:$0xff]  }
  0x94   :  { %1716 = vmatprep.subr.bf16.mxu1 %v1986_v37  ;;  %v2005_v37 = vld [vmem:[#allocation10 + $0x30] sm:$0xff]  }
  0x96   :  { %998 = vmatpush1.bf16.msra.mxu0 %v1932_v6 }
  0x97   :  { %999 = vmatprep.subr.bf16.mxu0 %v1937_v8  ;;  %1717 = vmatpush3.bf16.msra.mxu1 %v1987_v38  ;;  %v2006_v38 = vld [vmem:[#allocation10 + $0x28] sm:$0xff]  }
  0x98   :  { %1718 = vmatprep.subr.bf16.mxu1 %v1988_v39  ;;  %v2007_v39 = vld [vmem:[#allocation10 + $0x20] sm:$0xff]  }
  0x9a   :  { %1000 = vmatpush1.bf16.msra.mxu0 %v1935_v10 }
  0x9b   :  { %1001 = vmatprep.subr.bf16.mxu0 %v1940_v11  ;;  %1719 = vmatpush3.bf16.msra.mxu1 %v1989_v40  ;;  %v2008_v40 = vld [vmem:[#allocation10 + $0x18] sm:$0xff]  }
  0x9c   :  { %1720 = vmatprep.subr.bf16.mxu1 %v1990_v41 }
  0x9e   :  { %1002 = vmatpush1.bf16.msra.mxu0 %v1938_v12 }
  0x9f   :  { %1003 = vmatprep.subr.bf16.mxu0 %v1943_v54  ;;  %1721 = vmatpush3.bf16.msra.mxu1 %v1991_v42 }
  0xa0   :  { %1722 = vmatprep.subr.bf16.mxu1 %v1992_v43 }
  0xa2   :  { %1004 = vmatpush2.bf16.msra.mxu0 %v1941_v13 }
  0xa3   :  { %1005 = vmatprep.subr.bf16.mxu0 %v1946_v14  ;;  %1723 = vmatpush3.bf16.msra.mxu1 %v1993_v44  ;;  %v1670_v44 = vld [vmem:[%s2295_s4] ss:$0 sm:$0xff] }
  0xa4   :  { %1724 = vmatprep.subr.bf16.mxu1 %v1994_v45 }
  0xa6   :  { %1006 = vmatpush2.bf16.msra.mxu0 %v1944_v15 }
  0xa7   :  { %1007 = vmatprep.subr.bf16.mxu0 %v1949_v16  ;;  %1725 = vmatpush3.bf16.msra.mxu1 %v1995_v46 }
  0xa8   :  { %1750 = vmatprep.subr.bf16.mxu1 %v2153_v47 }
  0xaa   :  { %1008 = vmatpush2.bf16.msra.mxu0 %v1947_v17 }
  0xab   :  { %1009 = vmatprep.subr.bf16.mxu0 %v1952_v18 }
  0xae   :  { %1010 = vmatpush2.bf16.msra.mxu0 %v1950_v19 }
  0xaf   :  { %1011 = vmatprep.subr.bf16.mxu0 %v1955_v20 }
  0xb2   :  { %1012 = vmatpush2.bf16.msra.mxu0 %v1953_v21 }
  0xb3   :  { %1013 = vmatprep.subr.bf16.mxu0 %v1958_v22 }
  0xb6   :  { %1014 = vmatpush2.bf16.msra.mxu0 %v1956_v23 }
  0xb7   :  { %1015 = vmatprep.subr.bf16.mxu0 %v1961_v24 }
  0xba   :  { %1016 = vmatpush2.bf16.msra.mxu0 %v1959_v25 }
  0xbb   :  { %1017 = vmatprep.subr.bf16.mxu0 %v1967_v26 }
  0xbe   :  { %1018 = vmatpush2.bf16.msra.mxu0 %v1965_v29  ;;  %v1997_v29 = vld [vmem:[#allocation8 + $0x30] sm:$0xff]  }
  0xbf   :  { %1770 = vmatprep.subr.bf16.mxu0 %v2153_v47 }
  0xc1   :  { %1020 = vmatmul.mubr.bf16.vlgmr.msra.gmra.mxu0 %v294_v30  ;;  %v1998_v30 = vld [vmem:[#allocation8 + $0x28] sm:$0xff]  }
  0xc2   :  { %1786 = vmatprep.mubr.msk.bf16.mxu0 %vm2154_vm1, %v2153_v47  ;;  %1771 = vmatpush3.bf16.msra.mxu0 %v2004_v36 }
  0xc3   :  { %1772 = vmatprep.subr.bf16.mxu0 %v2153_v47 }
  0xc6   :  { %1773 = vmatpush3.bf16.msra.mxu0 %v2005_v37 }
  0xc7   :  { %1774 = vmatprep.subr.bf16.mxu0 %v2153_v47 }
  0xca   :  { %1775 = vmatpush3.bf16.msra.mxu0 %v2006_v38 }
  0xcb   :  { %1776 = vmatprep.subr.bf16.mxu0 %v2153_v47 }
  0xce   :  { %1777 = vmatpush3.bf16.msra.mxu0 %v2007_v39 }
  0xcf   :  { %1778 = vmatprep.subr.bf16.mxu0 %v2153_v47 }
  0xd2   :  { %1779 = vmatpush3.bf16.msra.mxu0 %v2008_v40 }
  0xd3   :  { %1780 = vmatprep.subr.bf16.mxu0 %v2153_v47 }
 0x141   :  { %v935_v50 = vpop.f32.mrf.mxu0 }
 0x142   :  { %v978_v49 = vpop.f32.mrf.mxu1  ;;  %v936_v0 = vadd.f32 %v935_v50, %v400_v59 }
 0x143   :  { %v937_v56 = vpop.f32.mrf.mxu0 }
 0x144   :  { %v980_v51 = vpop.f32.mrf.mxu1  ;;  %v938_v63 = vadd.f32 %v937_v56, %v404_v58  ;;  %v979_v7 = vadd.f32 %v978_v49, %v936_v0  ;;  %v2009_v56 = vld [vmem:[#allocation10 + $0x10] sm:$0xff]  }
 0x145   :  { %v939_v60 = vpop.f32.mrf.mxu0  ;;  %1781 = vmatpush3.bf16.msra.mxu0 %v2009_v56 }
 0x146   :  { %v982_v57 = vpop.f32.mrf.mxu1  ;;  %v940_v2 = vadd.f32 %v939_v60, %v400_v59  ;;  %v981_v5 = vadd.f32 %v980_v51, %v938_v63  ;;  %1782 = vmatprep.subr.bf16.mxu0 %v2153_v47  ;;  %v1687_v59 = vld [vmem:[%s2297_s6] ss:$0 sm:$0xff] }
 0x147   :  { %v941_v1 = vpop.f32.mrf.mxu0 }
 0x148   :  { %v984_v61 = vpop.f32.mrf.mxu1  ;;  %v942_v6 = vadd.f32 %v941_v1, %v404_v58  ;;  %v983_v9 = vadd.f32 %v982_v57, %v940_v2  ;;  %v2010_v57 = vld [vmem:[#allocation10 + $0x8] sm:$0xff]   ;;  %v2011_v58 = vld [vmem:[#allocation10] sm:$0xff]  }
 0x149   :  { %1783 = vmatpush3.bf16.msra.mxu0 %v2010_v57 }
 0x14a   :  { %v1064_v62 = vpop.f32.mrf.mxu1  ;;  %v985_v13 = vadd.f32 %v984_v61, %v942_v6  ;;  %1784 = vmatprep.subr.bf16.mxu0 %v2153_v47 }
 0x14c   :  { %v1066_v3 = vpop.f32.mrf.mxu1 }
 0x14d   :  { %1785 = vmatpush3.bf16.msra.mxu0 %v2011_v58 }
 0x14e   :  { %v1068_v12 = vpop.f32.mrf.mxu1 }
 0x150   :  { %v1070_v20 = vpop.f32.mrf.mxu1 }
 0x181   :  { %v1021_v4 = vpop.f32.mrf.mxu0 }
 0x182   :  { %v1022_v11 = vadd.f32 %v1021_v4, %v979_v7 }
 0x183   :  { %v1023_v8 = vpop.f32.mrf.mxu0 }
 0x184   :  { %v1024_v10 = vadd.f32 %v1023_v8, %v981_v5  ;;  %v1065_v19 = vadd.f32 %v1064_v62, %v1022_v11  ;;  %v2155_v5 = vmov 1966171168   ;;  %v1696_v8 = vld [vmem:[%s2299_s8] ss:$0 sm:$0xff] }
 0x185   :  { %v1025_v54 = vpop.f32.mrf.mxu0  ;;  %v1489_v6 = vunpack.c.l.s4 %v2155_v5 }
 0x186   :  { %v1026_v14 = vadd.f32 %v1025_v54, %v983_v9  ;;  %v1067_v16 = vadd.f32 %v1066_v3, %v1024_v10  ;;  %v1073_v25 = vmax.f32 %v1065_v19, 0.0 }
 0x187   :  { %v1027_v15 = vpop.f32.mrf.mxu0 }
 0x188   :  { %v1069_v17 = vadd.f32 %v1068_v12, %v1026_v14  ;;  %v1028_v18 = vadd.f32 %v1027_v15, %v985_v13  ;;  %v1074_v23 = vmax.f32 %v1067_v16, 0.0 }
 0x18a   :  { %v1071_v21 = vadd.f32 %v1070_v20, %v1028_v18  ;;  %v1075_v22 = vmax.f32 %v1069_v17, 0.0 }
 0x18c   :  { %v1076_v24 = vmax.f32 %v1071_v21, 0.0  ;;  %v1077_v28 = vpack.c.bf16 %v1075_v22, %v1073_v25 }
 0x18e   :  { %v1078_v26 = vpack.c.bf16 %v1076_v24, %v1074_v23 }
 0x190   :  { %1246 = vmatprep.mubr.bf16.mxu1 %v1078_v26 }
 0x191   :  { %1247 = vmatmul.mubr.bf16.vlgmr.msra.gmra.mxu1 %v1077_v28 }
 0x192   :  { %1751 = vmatpush3.bf16.msra.mxu1 %v1996_v27  ;;  %1766 = vmatprep.mubr.msk.bf16.mxu1 %vm2154_vm1, %v2153_v47 }
 0x193   :  { %1752 = vmatprep.subr.bf16.mxu1 %v2153_v47 }
 0x196   :  { %1753 = vmatpush3.bf16.msra.mxu1 %v1997_v29 }
 0x197   :  { %1754 = vmatprep.subr.bf16.mxu1 %v2153_v47 }
 0x19a   :  { %1755 = vmatpush3.bf16.msra.mxu1 %v1998_v30 }
 0x19b   :  { %1756 = vmatprep.subr.bf16.mxu1 %v2153_v47 }
 0x19e   :  { %1757 = vmatpush3.bf16.msra.mxu1 %v1999_v31 }
 0x19f   :  { %1758 = vmatprep.subr.bf16.mxu1 %v2153_v47 }
 0x1a2   :  { %1759 = vmatpush3.bf16.msra.mxu1 %v2000_v32 }
 0x1a3   :  { %1760 = vmatprep.subr.bf16.mxu1 %v2153_v47 }
 0x1a6   :  { %1761 = vmatpush3.bf16.msra.mxu1 %v2001_v33 }
 0x1a7   :  { %1762 = vmatprep.subr.bf16.mxu1 %v2153_v47 }
 0x1aa   :  { %1763 = vmatpush3.bf16.msra.mxu1 %v2002_v34 }
 0x1ab   :  { %1764 = vmatprep.subr.bf16.mxu1 %v2153_v47  ;;  %v1490_v47 = vunpack.c.0.s8 %v1489_v6 }
 0x1ad   :  { %v1493_v54 = vsub.s32 %v1490_v47, %v2233_v48 }
 0x1ae   :  { %1765 = vmatpush3.bf16.msra.mxu1 %v2003_v35 }
 0x251   :  { %v1726_v41 = vpop.f32.mrf.mxu1 }
 0x253   :  { %v1727_v42 = vpop.f32.mrf.mxu1 }
 0x254   :  { %v1728_v43 = vadd.f32 %v1727_v42, %v1726_v41 }
 0x255   :  { %v1729_v45 = vpop.f32.mrf.mxu1 }
 0x256   :  { %v1249_v49 = vadd.f32 %v1728_v43, %v1670_v44 }
 0x257   :  { %v1730_v46 = vpop.f32.mrf.mxu1 }
 0x258   :  { %v1731_v50 = vadd.f32 %v1730_v46, %v1729_v45  ;;  %v1255_v52 = vmax.f32 %v1249_v49, 0.0 }
 0x25a   :  { %v1252_v51 = vadd.f32 %v1731_v50, %v1670_v44 }
 0x25c   :  { %v1256_v53 = vmax.f32 %v1252_v51, 0.0 }
 0x25e   :  { %v1257_v55 = vpack.c.bf16 %v1256_v53, %v1255_v52 }
 0x260   :  { %1767 = vmatmul.mubr.bf16.vlgmr.msra.gmra.mxu1 %v1257_v55 }
 0x320   :  { %v1363_v60 = vpop.f32.mrf.mxu1 }
 0x321   :  { %v1364_v62 = vadd.f32 %v1687_v59, %v1363_v60 }
 0x322   :  { %v1768_v61 = vpop.f32.mrf.mxu1 }
 0x323   :  { %v1370_v2 = vmax.f32 %v1364_v62, 0.0 }
 0x324   :  { %v1366_v63 = vpop.f32.mrf.mxu1 }
 0x325   :  { %v1367_v0 = vadd.f32 %v1687_v59, %v1366_v63 }
 0x326   :  { %v1769_v1 = vpop.f32.mrf.mxu1 }
 0x327   :  { %v1371_v3 = vmax.f32 %v1367_v0, 0.0 }
 0x329   :  { %v1372_v4 = vpack.c.bf16 %v1371_v3, %v1370_v2 }
 0x32b   :  { %1787 = vmatmul.mubr.bf16.vlgmr.msra.gmra.mxu0 %v1372_v4 }
 0x3eb   :  { %v1478_v7 = vpop.f32.mrf.mxu0 }
 0x3ec   :  { %v1479_v11 = vadd.f32 %v1696_v8, %v1478_v7 }
 0x3ed   :  { %v1788_v9 = vpop.f32.mrf.mxu0 }
 0x3ef   :  { %v1481_v10 = vpop.f32.mrf.mxu0 }
 0x3f0   :  { %v1482_v12 = vadd.f32 %v1696_v8, %v1481_v10 }
 0x3f1   :  { %v1789_v13 = vpop.f32.mrf.mxu0 }
 0x3f2   :  { %v1485_v14 = vpack.c.bf16 %v1482_v12, %v1479_v11  ;;  %v1705_v15 = vpack.c.bf16 %v1482_v12, %v1482_v12 }
 0x3f4   :  { %v1494_v16 = vrot.slane %v1485_v14, %v1493_v54  ;;  %v1501_v17 = vrot.slane %v1705_v15, %v1493_v54 }
 0x3f6   :  { %v1502_v18 = vcombine.high %v1494_v16, %v1494_v16  ;;  %v1503_v19 = vcombine.high %v1501_v17, %v1501_v17  ;;  %v1510_v20 = vrot.slane %v1494_v16, %v1493_v54  ;;  %v1517_v21 = vrot.slane %v1501_v17, %v1493_v54  ;;  %1706 = vst.sshfl [vmem:[#allocation11] sm:$0x1 pattern:$0x73625140] %v1494_v16 }
 0x3f7   :  { %1708 = vst.sshfl [vmem:[#allocation11 + $0x4] sm:$0x1 pattern:$0x73625140] %v1501_v17 }
 0x3f8   :  { %v1524_v22 = vrot.slane %v1502_v18, %v1493_v54  ;;  %v1531_v23 = vrot.slane %v1503_v19, %v1493_v54  ;;  %v1532_v24 = vcombine.high %v1510_v20, %v1510_v20  ;;  %v1533_v25 = vcombine.high %v1517_v21, %v1517_v21  ;;  %1707 = vst.sshfl [vmem:[#allocation11 + $0x1] sm:$0x1 pattern:$0x73625140] %v1502_v18 }
 0x3f9   :  { %1709 = vst.sshfl [vmem:[#allocation11 + $0x5] sm:$0x1 pattern:$0x73625140] %v1503_v19 }
 0x3fa   :  { %v1534_v26 = vcombine.high %v1524_v22, %v1524_v22  ;;  %v1535_v27 = vcombine.high %v1531_v23, %v1531_v23  ;;  %1546 = vst [vmem:[#allocation11 + $0x2] sm:$0x1] %v1532_v24  ;;  %1550 = vst [vmem:[#allocation11 + $0x6] sm:$0x1] %v1533_v25 }
 0x3fc   :  { %1547 = vst [vmem:[#allocation11 + $0x3] sm:$0x1] %v1534_v26  ;;  %1551 = vst [vmem:[#allocation11 + $0x7] sm:$0x1] %v1535_v27 }
 0x3fd   :  { %1556 = vsyncadd [#allocation4], 112  ;;  %s2156_s6 = smov [#allocation11]  }
 0x3fe   :  { %s1557_s8 = sshll.u32 %s2156_s6, 4  ;;  %s1558_s8 = int_to_ptr.vmem [resolvable:$true] %s1557_s8 }
 0x3ff   :  { %s2112_s21 = scalar_lea.vmem %s1558_s8, 16  ;;  %s2116_s22 = scalar_lea.vmem %s1558_s8, 128 }
 0x400   :  { %p2113_p11 = scmp.ne.s32.totalorder %s1558_s8, %s2112_s21  ;;  %p2117_p12 = scmp.lt.s32.totalorder %s1558_s8, %s1558_s8 }
 0x401   :  { %p2118_p13 = scmp.lt.s32.totalorder %s2116_s22, %s2112_s21 }
 0x403   :  { %p2119_p0 = por %p2118_p13, %p2117_p12 }
 0x405   :  { %p2120_p1 = pnand %p2119_p0, %p2113_p11 }
 0x407   :  { %2123 = shalt.err (!%p2120_p1)
}
 0x408   :  { %s2157_s23 = smov 16   ;;  %s2158_s24 = smov 1  }
 0x409   :  { %1563 = dma.vmem_to_hbm [thread:$0]  %s1558_s8, 16, %s2300_s9, [#allocation4], %s2157_s23, %s2157_s23, %s2158_s24  }
 0x40a   :  { %2138 = dma.done.wait [#allocation4], 128  }
 0x40b   :  { %2139 = vsyncadd [#allocation4], 4294967168 }
 0x40c   :  { %1567 = vsyncpa [#allocation3], 1 }
 0x40d   :  { %1568 = vsyncpa [#allocation6], 1 }
 0x40e   :  { %1569 = vsyncpa [#allocation9], 1 }
 0x40f   :  { %1570 = vsyncpa [#allocation4], 1 }

</bundles_post_ra>
